<compile_context>
chip_gen: v5e
topology: v5e:2x2
jax: 0.10.0
libtpu: 0.0.40
codegen_flags: <defaults>
</compile_context>

<pallas_src>
import functools

import jax
import jax.numpy as jnp
from jax.experimental import pallas as pl
from jax.experimental.pallas import tpu as pltpu

_GATE_W = 128   # per-gate lane width (vreg-aligned)
_OUT_W = 128    # packed output lane width


def _earliest_kernel(x_ref, w_ih_ref, w_head_ref, smalls_ref, logit_u_ref,
                     out_ref, *, nclasses):
    """Single fused forward step (t = 1, hidden state == 0).

    Packed output lanes: [0:C] logits, [C] action, [C+1] log_pi,
    [C+2] halt_w (= -log prob), [C+3] baseline, rest zero.
    """
    f32 = jnp.float32
    G = _GATE_W
    C = nclasses

    # ---- GRU cell, h0 == 0, PyTorch gate order (r, z, n), gates vreg-aligned.
    # All input biases (and the r/z recurrent biases) are folded into w_ih via
    # the constant-1 column of x; b_hh_n (scaled by r) lives in smalls_ref[0].
    gi = jnp.dot(x_ref[...], w_ih_ref[...], preferred_element_type=f32)  # (B, 3G)
    r = jax.nn.sigmoid(gi[:, 0:G])
    z = jax.nn.sigmoid(gi[:, G:2 * G])
    n = jnp.tanh(gi[:, 2 * G:3 * G] + r * smalls_ref[0:1, :])
    output = (1.0 - z) * n                    # == (1-z)*n + z*h0 with h0 == 0
    # Padded lanes (>= nhid) of `output` are exactly 0 by construction.

    # ---- fused heads: classifier | Controller(x3) | Baseline, lane-dense.
    # (t = 1 already folded into the head bias row smalls_ref[1].)
    head = (jnp.dot(output, w_head_ref[...], preferred_element_type=f32)
            + smalls_ref[1:2, :])             # (B, 128)

    # Controller math full-width; lanes C..C+2 all hold the controller
    # pre-activation, so the per-lane select below picks correct values.
    # Bernoulli(sigmoid(c)): u < sigmoid(c)  <=>  logit(u) < c.
    action = (logit_u_ref[...] < head).astype(f32)
    # stable log(sigmoid(x)) = min(x,0) - log(1 + exp(-|x|))
    # (log/exp kept instead of log1p for guaranteed Mosaic lowering; the
    #  accuracy delta is < 1e-8 absolute in the log-prob.)
    ls_pos = jnp.minimum(head, 0.0) - jnp.log(1.0 + jnp.exp(-jnp.abs(head)))
    ls_neg = ls_pos - head                    # log sigmoid(-x) = log sigmoid(x) - x
    log_pi = action * ls_pos + (1.0 - action) * ls_neg
    halt_w = -ls_pos                          # -log(p)

    lane = jax.lax.broadcasted_iota(jnp.int32, head.shape, 1)
    out = jnp.where(lane < C, head,
          jnp.where(lane == C, action,
          jnp.where(lane == C + 1, log_pi,
          jnp.where(lane == C + 2, halt_w,
          jnp.where(lane == C + 3, head, 0.0)))))
    out_ref[...] = out                        # single lane-dense unmasked store


def fuse_params(params):
    """One-time host-side fusion/padding of EARLIEST parameters into the
    lane-aligned kernel operands (the loop constant t = 1 is folded in)."""
    w_ih, b_ih, b_hh = params["w_ih"], params["b_ih"], params["b_hh"]
    V, three_h = w_ih.shape
    H = three_h // 3
    C = params["w_out"].shape[1]
    assert H <= _GATE_W and C + 4 <= _OUT_W
    t_val = jnp.float32(1.0)

    def lane_pad(a, width):
        return jnp.pad(a, ((0, 0), (0, width - a.shape[1])))

    # GRU input weights: one 128-lane block per gate; bias folded in as an
    # extra input row (driven by the constant-1 column appended to x).
    w_r, w_z, w_n = w_ih[:, :H], w_ih[:, H:2 * H], w_ih[:, 2 * H:]
    b_r = b_ih[:, :H] + b_hh[:, :H]
    b_z = b_ih[:, H:2 * H] + b_hh[:, H:2 * H]
    b_n_in = b_ih[:, 2 * H:]                       # b_hh_n stays separate (scaled by r)
    w_gates = jnp.concatenate([lane_pad(w_r, _GATE_W), lane_pad(w_z, _GATE_W),
                               lane_pad(w_n, _GATE_W)], axis=1)        # (V, 384)
    b_gates = jnp.concatenate([lane_pad(b_r, _GATE_W), lane_pad(b_z, _GATE_W),
                               lane_pad(b_n_in, _GATE_W)], axis=1)     # (1, 384)
    w_ih_aug = jnp.concatenate([w_gates, b_gates], axis=0)             # (V+1, 384)

    # Fused heads: [logits | c_lin c_lin c_lin | baseline | 0...].  The
    # controller column is replicated at lanes C..C+2 so action/log_pi/halt_w
    # can be computed full-width and blended with a lane-iota select.
    w_c_h, w_c_t = params["w_c"][:H], params["w_c"][H:H + 1]
    w_b_h, w_b_t = params["w_b"][:H], params["w_b"][H:H + 1]
    w_head = jnp.concatenate([params["w_out"], w_c_h, w_c_h, w_c_h, w_b_h], axis=1)
    w_head = jnp.pad(w_head, ((0, _GATE_W - H), (0, _OUT_W - (C + 4))))  # (128, 128)

    b_c_eff = params["b_c"] + t_val * w_c_t        # t = 1 folded in
    b_b_eff = params["b_b"] + t_val * w_b_t
    b_head = jnp.concatenate([params["b_out"], b_c_eff, b_c_eff, b_c_eff, b_b_eff],
                             axis=1)
    b_head = lane_pad(b_head, _OUT_W)              # (1, 128)
    b_hh_n = lane_pad(b_hh[:, 2 * H:], _GATE_W)    # (1, 128), zeros at lanes >= H

    smalls = jnp.concatenate([b_hh_n, b_head], axis=0)   # (2, 128)
    return {"w_ih_aug": w_ih_aug, "w_head": w_head, "smalls": smalls,
            "nhid": H, "nclasses": C}


@functools.partial(jax.jit, static_argnames=("nclasses",))
def _forward_jit(X, u, w_ih_aug, w_head, smalls, *, nclasses):
    x0 = X[0].astype(jnp.float32)                          # (B, V)
    B = x0.shape[0]
    # constant-1 column drives the folded gate-bias row of w_ih_aug
    x_aug = jnp.concatenate([x0, jnp.ones((B, 1), jnp.float32)], axis=1)
    # Bernoulli threshold in logit space: u < sigmoid(c)  <=>  logit(u) < c.
    logit_u = jnp.log(u) - jnp.log1p(-u)
    logit_u = jnp.broadcast_to(logit_u.astype(jnp.float32), (B, _OUT_W))

    kernel = functools.partial(_earliest_kernel, nclasses=nclasses)
    vmem = pl.BlockSpec(memory_space=pltpu.MemorySpace.VMEM)  # whole-array VMEM block
    packed = pl.pallas_call(                                   # no grid: single block
        kernel,
        out_shape=jax.ShapeDtypeStruct((B, _OUT_W), jnp.float32),
        in_specs=[vmem, vmem, vmem, vmem, vmem],
        out_specs=vmem,
    )(x_aug, w_ih_aug, w_head, smalls, logit_u)

    C = nclasses
    logits = packed[:, 0:C]
    aux = {
        "actions": packed[:, C:C + 1],
        "log_pi": packed[:, C + 1:C + 2],
        "halt_probs": packed[:, C + 2:C + 3],
        "baselines": packed[:, C + 3:C + 4],
    }
    return logits, aux


def earliest_forward(X, fused, u):
    """Returns (logits (B, C), halting_mean scalar, aux) mirroring EARLIEST.forward."""
    T, B, V = X.shape
    # TODO(synk): reference forward is only well-defined for T == 2 (one loop step).
    assert T == 2, "reference forward is only well-defined for T == 2"
    logits, aux = _forward_jit(X, u, fused["w_ih_aug"], fused["w_head"],
                               fused["smalls"], nclasses=fused["nclasses"])
    # Single-step path: every halting point collapses to t = 1, so the reference
    # `(1 + halt_points).mean() / (T + 1)` is the constant 2 / (T + 1).
    halt_mean = jnp.float32(2.0 / (T + 1))
    return logits, halt_mean, aux


def init_params(key, ninp, nhid, nclasses):
    """Deterministic PyTorch-style uniform(-1/sqrt(fan_in), +) init; weights stored (in, out)."""
    ks = jax.random.split(key, 10)

    def unif(k, shape, s):
        return jax.random.uniform(k, shape, jnp.float32, minval=-s, maxval=s)

    s_rnn = 1.0 / float(nhid) ** 0.5
    s_out = 1.0 / float(nhid) ** 0.5
    s_ctl = 1.0 / float(nhid + 1) ** 0.5
    return {
        "w_ih": unif(ks[0], (ninp, 3 * nhid), s_rnn),   # nn.GRU weight_ih_l0 (transposed)
        "w_hh": unif(ks[1], (nhid, 3 * nhid), s_rnn),   # nn.GRU weight_hh_l0 (transposed)
        "b_ih": unif(ks[2], (1, 3 * nhid), s_rnn),
        "b_hh": unif(ks[3], (1, 3 * nhid), s_rnn),
        "w_out": unif(ks[4], (nhid, nclasses), s_out),  # self.out
        "b_out": unif(ks[5], (1, nclasses), s_out),
        "w_c": unif(ks[6], (nhid + 1, 1), s_ctl),       # Controller fc
        "b_c": unif(ks[7], (1, 1), s_ctl),
        "w_b": unif(ks[8], (nhid + 1, 1), s_ctl),       # BaselineNetwork fc
        "b_b": unif(ks[9], (1, 1), s_ctl),
    }


if __name__ == "__main__":
    T, B, V, H, C = 2, 2, 16, 32, 4          # seq, batch, features, nhid, nclasses
    key = jax.random.PRNGKey(0)
    kx, ku, kp = jax.random.split(key, 3)

    X = jax.random.normal(kx, (T, B, V), dtype=jnp.float32)   # time-major (T, B, V)
    u = jax.random.uniform(ku, (B, 1), dtype=jnp.float32)     # uniform draw for Bernoulli
    params = init_params(kp, V, H, C)

    fused = fuse_params(params)              # one-time host-side fusion (cached)
    logits, halt_mean, aux = earliest_forward(X, fused, u)
    jax.block_until_ready((logits, halt_mean, aux))
    print("KERNEL_OK")
</pallas_src>

<mosaic_0001>
module attributes {stable_mosaic.version = 11 : i64} {
  func.func @_earliest_kernel(%arg0: memref<2x17xf32, #tpu.memory_space<vmem>>, %arg1: memref<17x384xf32, #tpu.memory_space<vmem>>, %arg2: memref<128x128xf32, #tpu.memory_space<vmem>>, %arg3: memref<2x128xf32, #tpu.memory_space<vmem>>, %arg4: memref<2x128xf32, #tpu.memory_space<vmem>>, %arg5: memref<2x128xf32, #tpu.memory_space<vmem>>) attributes {dimension_semantics = [], scalar_prefetch = 0 : i64, scratch_operands = 0 : i64, tpu.core_type = #tpu.core_type<tc>} {
    %c0 = arith.constant 0 : index
    %c0_0 = arith.constant 0 : index
    %0 = vector.load %arg0[%c0, %c0_0] : memref<2x17xf32, #tpu.memory_space<vmem>>, vector<2x17xf32>
    %c0_1 = arith.constant 0 : index
    %c0_2 = arith.constant 0 : index
    %1 = vector.load %arg1[%c0_1, %c0_2] : memref<17x384xf32, #tpu.memory_space<vmem>>, vector<17x384xf32>
    %cst = arith.constant dense<0.000000e+00> : vector<2x384xf32>
    %2 = tpu.matmul %0, %1, %cst {dimension_numbers = #tpu.dot_dimension_numbers<[1], [0], [0], [1], [0, 0, 1, 1], [], []>} : vector<2x17xf32>, vector<17x384xf32>, vector<2x384xf32> -> vector<2x384xf32>
    %3 = vector.extract_strided_slice %2 {offsets = [0, 0], sizes = [2, 128], strides = [1, 1]} : vector<2x384xf32> to vector<2x128xf32>
    %4 = arith.negf %3 : vector<2x128xf32>
    %5 = math.exp %4 : vector<2x128xf32>
    %cst_3 = arith.constant 1.000000e+00 : f32
    %6 = vector.broadcast %cst_3 : f32 to vector<2x128xf32>
    %7 = arith.addf %6, %5 : vector<2x128xf32>
    %8 = arith.divf %6, %7 : vector<2x128xf32>
    %9 = vector.extract_strided_slice %2 {offsets = [0, 128], sizes = [2, 128], strides = [1, 1]} : vector<2x384xf32> to vector<2x128xf32>
    %10 = arith.negf %9 : vector<2x128xf32>
    %11 = math.exp %10 : vector<2x128xf32>
    %cst_4 = arith.constant 1.000000e+00 : f32
    %12 = vector.broadcast %cst_4 : f32 to vector<2x128xf32>
    %13 = arith.addf %12, %11 : vector<2x128xf32>
    %14 = arith.divf %12, %13 : vector<2x128xf32>
    %15 = vector.extract_strided_slice %2 {offsets = [0, 256], sizes = [2, 128], strides = [1, 1]} : vector<2x384xf32> to vector<2x128xf32>
    %c0_5 = arith.constant 0 : index
    %c0_6 = arith.constant 0 : index
    %16 = vector.load %arg3[%c0_5, %c0_6] : memref<2x128xf32, #tpu.memory_space<vmem>>, vector<1x128xf32>
    %17 = vector.broadcast %16 : vector<1x128xf32> to vector<2x128xf32>
    %18 = arith.mulf %8, %17 : vector<2x128xf32>
    %19 = arith.addf %15, %18 : vector<2x128xf32>
    %20 = math.tanh %19 : vector<2x128xf32>
    %cst_7 = arith.constant 1.000000e+00 : f32
    %21 = vector.broadcast %cst_7 : f32 to vector<2x128xf32>
    %22 = arith.subf %21, %14 : vector<2x128xf32>
    %23 = arith.mulf %22, %20 : vector<2x128xf32>
    %c0_8 = arith.constant 0 : index
    %c0_9 = arith.constant 0 : index
    %24 = vector.load %arg2[%c0_8, %c0_9] : memref<128x128xf32, #tpu.memory_space<vmem>>, vector<128x128xf32>
    %cst_10 = arith.constant dense<0.000000e+00> : vector<2x128xf32>
    %25 = tpu.matmul %23, %24, %cst_10 {dimension_numbers = #tpu.dot_dimension_numbers<[1], [0], [0], [1], [0, 0, 1, 1], [], []>} : vector<2x128xf32>, vector<128x128xf32>, vector<2x128xf32> -> vector<2x128xf32>
    %c1 = arith.constant 1 : index
    %c0_11 = arith.constant 0 : index
    %26 = vector.load %arg3[%c1, %c0_11] : memref<2x128xf32, #tpu.memory_space<vmem>>, vector<1x128xf32>
    %27 = vector.broadcast %26 : vector<1x128xf32> to vector<2x128xf32>
    %28 = arith.addf %25, %27 : vector<2x128xf32>
    %c0_12 = arith.constant 0 : index
    %c0_13 = arith.constant 0 : index
    %29 = vector.load %arg4[%c0_12, %c0_13] : memref<2x128xf32, #tpu.memory_space<vmem>>, vector<2x128xf32>
    %30 = arith.cmpf olt, %29, %28 : vector<2x128xf32>
    %31 = arith.extui %30 : vector<2x128xi1> to vector<2x128xi32>
    %32 = arith.sitofp %31 : vector<2x128xi32> to vector<2x128xf32>
    %cst_14 = arith.constant 0.000000e+00 : f32
    %33 = vector.broadcast %cst_14 : f32 to vector<2x128xf32>
    %34 = arith.minimumf %28, %33 : vector<2x128xf32>
    %35 = math.absf %28 : vector<2x128xf32>
    %cst_15 = arith.constant 0.000000e+00 : f32
    %36 = vector.broadcast %cst_15 : f32 to vector<2x128xf32>
    %37 = arith.subf %36, %35 : vector<2x128xf32>
    %38 = math.exp %37 : vector<2x128xf32>
    %cst_16 = arith.constant 1.000000e+00 : f32
    %39 = vector.broadcast %cst_16 : f32 to vector<2x128xf32>
    %40 = arith.addf %39, %38 : vector<2x128xf32>
    %41 = math.log %40 : vector<2x128xf32>
    %42 = arith.subf %34, %41 : vector<2x128xf32>
    %43 = arith.subf %42, %28 : vector<2x128xf32>
    %44 = arith.mulf %32, %42 : vector<2x128xf32>
    %cst_17 = arith.constant 1.000000e+00 : f32
    %45 = vector.broadcast %cst_17 : f32 to vector<2x128xf32>
    %46 = arith.subf %45, %32 : vector<2x128xf32>
    %47 = arith.mulf %46, %43 : vector<2x128xf32>
    %48 = arith.addf %44, %47 : vector<2x128xf32>
    %cst_18 = arith.constant 0.000000e+00 : f32
    %49 = vector.broadcast %cst_18 : f32 to vector<2x128xf32>
    %50 = arith.subf %49, %42 : vector<2x128xf32>
    %51 = tpu.iota {dimensions = array<i32: 1>} : vector<2x128xi32>
    %c4_i32 = arith.constant 4 : i32
    %52 = vector.broadcast %c4_i32 : i32 to vector<2x128xi32>
    %53 = arith.cmpi slt, %51, %52 : vector<2x128xi32>
    %c4_i32_19 = arith.constant 4 : i32
    %54 = vector.broadcast %c4_i32_19 : i32 to vector<2x128xi32>
    %55 = arith.cmpi eq, %51, %54 : vector<2x128xi32>
    %c5_i32 = arith.constant 5 : i32
    %56 = vector.broadcast %c5_i32 : i32 to vector<2x128xi32>
    %57 = arith.cmpi eq, %51, %56 : vector<2x128xi32>
    %c6_i32 = arith.constant 6 : i32
    %58 = vector.broadcast %c6_i32 : i32 to vector<2x128xi32>
    %59 = arith.cmpi eq, %51, %58 : vector<2x128xi32>
    %c7_i32 = arith.constant 7 : i32
    %60 = vector.broadcast %c7_i32 : i32 to vector<2x128xi32>
    %61 = arith.cmpi eq, %51, %60 : vector<2x128xi32>
    %cst_20 = arith.constant 0.000000e+00 : f32
    %62 = vector.broadcast %cst_20 : f32 to vector<2x128xf32>
    %63 = arith.select %61, %28, %62 : vector<2x128xi1>, vector<2x128xf32>
    %64 = arith.select %59, %50, %63 : vector<2x128xi1>, vector<2x128xf32>
    %65 = arith.select %57, %48, %64 : vector<2x128xi1>, vector<2x128xf32>
    %66 = arith.select %55, %32, %65 : vector<2x128xi1>, vector<2x128xf32>
    %67 = arith.select %53, %28, %66 : vector<2x128xi1>, vector<2x128xf32>
    %c0_21 = arith.constant 0 : index
    %c0_22 = arith.constant 0 : index
    %68 = vector.load %arg5[%c0_21, %c0_22] : memref<2x128xf32, #tpu.memory_space<vmem>>, vector<2x128xf32>
    tpu.vector_store %arg5[%c0_21, %c0_22], %67 {strides = array<i32>} : memref<2x128xf32, #tpu.memory_space<vmem>>, vector<2x128xf32>,
    return
  }
}

</mosaic_0001>

<bundles_post_ra>
// kernel: _forward_jit.1
= control target key start
LH: loop header
LB: loop body
LE: loop exit
PB: predicated region body
PF: predicated region fallthrough
CT: control target
= control target key end

     0   :  { %10 = vsyncpa [#allocation3], 0  ;;  %s399_s0 = inlined_call_operand.vmem [shape: f32[2,17], index: 0, kind: input, shape index: {}]   ;;  %s400_s1 = inlined_call_operand.hbm [shape: f32[17,384], index: 1, kind: input, shape index: {}]   ;;  %s401_s2 = inlined_call_operand.hbm [shape: f32[128,128], index: 2, kind: input, shape index: {}]   ;;  %s402_s3 = inlined_call_operand.vmem [shape: f32[2,128], index: 3, kind: input, shape index: {}]   ;;  %s403_s4 = inlined_call_operand.vmem [shape: f32[2,128], index: 4, kind: input, shape index: {}]   ;;  %s404_s5 = inlined_call_operand.vmem [shape: f32[2,128], index: 5, kind: output, shape index: {}]  }
   0x1   :  { %s18_s20 = sshll.u32 %s400_s1, 4  ;;  %s19_s20 = int_to_ptr.hbm [resolvable:$true] %s18_s20 }
   0x2   :  { %11 = vsyncpa [#allocation5], 0  ;;  %s341_s21 = smov [#allocation2]   ;;  %s31_s25 = sshll.u32 %s401_s2, 4  ;;  %s32_s25 = int_to_ptr.hbm [resolvable:$true] %s31_s25 }
   0x3   :  { %s20_s22 = sshll.u32 %s341_s21, 4  ;;  %s342_s26 = smov 384   ;;  %s21_s22 = int_to_ptr.vmem [resolvable:$true] %s20_s22 }
   0x4   :  { %s343_s27 = smov 24   ;;  %s344_s28 = smov [#allocation4]  }
   0x5   :  { %26 = dma.hbm_to_vmem [thread:$0]  %s19_s20, 1152, %s21_s22, [#allocation3], %s342_s26, %s342_s26, %s343_s27  }
   0x6   :  { %s33_s29 = sshll.u32 %s344_s28, 4  ;;  %s345_s30 = smov 128   ;;  %s34_s29 = int_to_ptr.vmem [resolvable:$true] %s33_s29 }
   0x7   :  { %s346_s6 = smov 8  }
   0x8   :  { %39 = dma.hbm_to_vmem [thread:$0]  %s32_s25, 2048, %s34_s29, [#allocation5], %s345_s30, %s345_s30, %s346_s6  }
   0x9   :  { %337 = dma.done.wait [#allocation3], 1152  }
   0xa   :  { %338 = vsyncadd [#allocation3], 4294966144 }
   0xb   :  { %339 = dma.done.wait [#allocation5], 2048  }
   0xc   :  { %340 = vsyncadd [#allocation5], 4294965248  ;;  %vm66_vm0 = vcmask 1040384   ;;  %v59_v0 = vld [vmem:[#allocation2 + $0x30] sm:$0x1]  ;;  %v56_v2 = vld [vmem:[#allocation2 + $0x18] sm:$0xff] }
   0xd   :  { %v60_v1 = vld [vmem:[#allocation2 + $0x38] sm:$0x1]  ;;  %257 = vmatpush.msk.msra.mxu0 %vm66_vm0, %v59_v0  ;;  %v57_v3 = vld [vmem:[#allocation2 + $0x20] sm:$0xff]  ;;  %v54_v5 = vld [vmem:[#allocation2 + $0x8] sm:$0xff]  ;;  %vm62_vm1 = vcmask 138240  }
   0xe   :  { %259 = vmatpush.msk.msra.mxu1 %vm66_vm0, %v60_v1  ;;  %v53_v4 = vld [vmem:[#allocation2] sm:$0xff]  ;;  %v58_v8 = vld [vmem:[#allocation2 + $0x28] sm:$0xff]  ;;  %v55_v9 = vld [vmem:[#allocation2 + $0x10] sm:$0xff] }
   0xf   :  { %v61_v6 = vld [vmem:[#allocation2 + $0x40] sm:$0x1]  ;;  %90 = vmatpush.msra.mxu0 %v56_v2  ;;  %v195_v11 = vld [vmem:[#allocation4 + $0x70] sm:$0xff]  ;;  %v194_v12 = vld [vmem:[#allocation4 + $0x68] sm:$0xff] }
  0x10   :  { %110 = vmatpush.msra.mxu1 %v57_v3  ;;  %v52_v7 = vld [vmem:[%s399_s0] sm:$0x3]  ;;  %261 = vmatpush.msk.msra.mxu2 %vm66_vm0, %v61_v6  ;;  %v193_v13 = vld [vmem:[#allocation4 + $0x60] sm:$0xff]  ;;  %v191_v15 = vld [vmem:[#allocation4 + $0x50] sm:$0xff]  ;;  %v238_v6 = vlaneseq }
  0x11   :  { %91 = vmatpush.msra.mxu0 %v53_v4  ;;  %v196_v10 = vld [vmem:[#allocation4 + $0x78] sm:$0xff]  ;;  %v190_v16 = vld [vmem:[#allocation4 + $0x48] sm:$0xff]  ;;  %v189_v17 = vld [vmem:[#allocation4 + $0x40] sm:$0xff] }
  0x12   :  { %111 = vmatpush.msra.mxu1 %v54_v5  ;;  %258 = vmatmul.msk.f32.vlgmr.msra.gmra.mxu0 %vm62_vm1, %v52_v7  ;;  %v192_v14 = vld [vmem:[#allocation4 + $0x58] sm:$0xff]  ;;  %v187_v19 = vld [vmem:[#allocation4 + $0x30] sm:$0xff]  ;;  %v186_v20 = vld [vmem:[#allocation4 + $0x28] sm:$0xff] }
  0x13   :  { %260 = vmatmul.msk.f32.vlgmr.msra.gmra.mxu1 %vm62_vm1, %v52_v7  ;;  %130 = vmatpush.msra.mxu2 %v58_v8  ;;  %v188_v18 = vld [vmem:[#allocation4 + $0x38] sm:$0xff]  ;;  %v185_v25 = vld [vmem:[#allocation4 + $0x20] sm:$0xff]  ;;  %v183_v27 = vld [vmem:[#allocation4 + $0x10] sm:$0xff] }
  0x14   :  { %199 = vmatpush.msra.mxu3 %v196_v10  ;;  %v184_v26 = vld [vmem:[#allocation4 + $0x18] sm:$0xff]  ;;  %v182_v28 = vld [vmem:[#allocation4 + $0x8] sm:$0xff]  ;;  %v181_v29 = vld [vmem:[#allocation4] sm:$0xff]  ;;  %v347_v10 = vmov 0.0  }
  0x15   :  { %131 = vmatpush.msra.mxu2 %v55_v9  ;;  %v273_v45 = vld [vmem:[%s402_s3] ss:$0 sm:$0xff]  ;;  %v274_v61 = vld [vmem:[%s402_s3 + $0x1] ss:$0 sm:$0xff] }
  0x16   :  { %262 = vmatmul.msk.f32.vlgmr.msra.gmra.mxu2 %vm62_vm1, %v52_v7  ;;  %200 = vmatpush.msra.mxu3 %v195_v11  ;;  %v219_v5 = vld [vmem:[%s403_s4] sm:$0x3] }
  0x18   :  { %201 = vmatpush.msra.mxu3 %v194_v12  ;;  %v239_v12 = vand.u32 127, %v238_v6 }
  0x1a   :  { %202 = vmatpush.msra.mxu3 %v193_v13  ;;  %vm244_vm11 = vcmp.eq.s32.totalorder %v239_v12, 7  ;;  %vm243_vm12 = vcmp.eq.s32.totalorder %v239_v12, 6  ;;  %vm242_vm13 = vcmp.eq.s32.totalorder %v239_v12, 5  ;;  %vm241_vm14 = vcmp.eq.s32.totalorder %v239_v12, 4 }
  0x1b   :  { %vm240_vm15 = vcmp.lt.s32.totalorder %v239_v12, 4 }
  0x1c   :  { %203 = vmatpush.msra.mxu3 %v192_v14 }
  0x1e   :  { %204 = vmatpush.msra.mxu3 %v191_v15 }
  0x20   :  { %205 = vmatpush.msra.mxu3 %v190_v16 }
  0x22   :  { %206 = vmatpush.msra.mxu3 %v189_v17 }
  0x24   :  { %207 = vmatpush.msra.mxu3 %v188_v18 }
  0x26   :  { %208 = vmatpush.msra.mxu3 %v187_v19 }
  0x28   :  { %209 = vmatpush.msra.mxu3 %v186_v20 }
  0x2a   :  { %210 = vmatpush.msra.mxu3 %v185_v25 }
  0x2c   :  { %211 = vmatpush.msra.mxu3 %v184_v26 }
  0x2e   :  { %212 = vmatpush.msra.mxu3 %v183_v27 }
  0x30   :  { %213 = vmatpush.msra.mxu3 %v182_v28 }
  0x32   :  { %214 = vmatpush.msra.mxu3 %v181_v29 }
  0x8f   :  { %v93_v21 = vpop.f32.mrf.mxu0 }
  0x90   :  { %v113_v22 = vpop.f32.mrf.mxu1  ;;  %v263_v23 = vmul.f32 -1.442695, %v93_v21 }
  0x91   :  { %v264_v24 = vmul.f32 -1.442695, %v113_v22 }
  0x92   :  { %275 = vpow2.f32 %v263_v23 }
  0x93   :  { %277 = vpow2.f32 %v264_v24 }
  0x98   :  { %v276_v30 = vpop.eup %275 }
  0x99   :  { %v278_v31 = vpop.eup %277  ;;  %v139_v32 = vadd.f32 1.0, %v276_v30  ;;  %v133_v48 = vpop.f32.mrf.mxu2 }
  0x9a   :  { %v158_v33 = vadd.f32 1.0, %v278_v31 }
  0x9b   :  { %279 = vrcp.f32 %v139_v32  ;;  %v151_v39 = vand.u32 2147483648, %v139_v32  ;;  %v149_v42 = vand.u32 2147483647, %v139_v32  ;;  %vm145_vm3 = vweird.f32 %v139_v32 }
  0x9c   :  { %281 = vrcp.f32 %v158_v33  ;;  %vm164_vm6 = vweird.f32 %v158_v33  ;;  %v170_v52 = vand.u32 2147483648, %v158_v33  ;;  %v168_v53 = vand.u32 2147483647, %v158_v33 }
  0x9d   :  { %v152_v46 = vor.u32 1.1754944e-38, %v151_v39  ;;  %vm150_vm5 = vcmp.eq.f32.partialorder %v149_v42, 8.507059e+37 }
  0x9e   :  { %v171_v56 = vor.u32 1.1754944e-38, %v170_v52  ;;  %vm169_vm9 = vcmp.eq.f32.partialorder %v168_v53, 8.507059e+37 }
  0xa1   :  { %v280_v34 = vpop.eup %279 }
  0xa2   :  { %v282_v35 = vpop.eup %281  ;;  %v141_v36 = vmul.f32 %v280_v34, %v139_v32  ;;  %vm146_vm2 = vweird.f32 %v280_v34 }
  0xa3   :  { %v160_v37 = vmul.f32 %v282_v35, %v158_v33  ;;  %vm147_vm4 = vmor %vm145_vm3, %vm146_vm2  ;;  %vm165_vm7 = vweird.f32 %v282_v35 }
  0xa4   :  { %v142_v38 = vsub.f32 1.0, %v141_v36  ;;  %vm166_vm8 = vmor %vm164_vm6, %vm165_vm7 }
  0xa5   :  { %v161_v40 = vsub.f32 1.0, %v160_v37 }
  0xa6   :  { %v143_v41 = vmul.f32 %v280_v34, %v142_v38 }
  0xa7   :  { %v162_v43 = vmul.f32 %v282_v35, %v161_v40 }
  0xa8   :  { %v144_v44 = vadd.f32 %v280_v34, %v143_v41 }
  0xa9   :  { %v163_v50 = vadd.f32 %v282_v35, %v162_v43 }
  0xaa   :  { %v148_v47 = vsel %vm147_vm4, %v280_v34, %v144_v44 }
  0xab   :  { %v153_v49 = vsel %vm150_vm5, %v152_v46, %v148_v47  ;;  %v167_v55 = vsel %vm166_vm8, %v282_v35, %v163_v50 }
  0xac   :  { %v176_v51 = vmul.f32 %v273_v45, %v153_v49  ;;  %v172_v57 = vsel %vm169_vm9, %v171_v56, %v167_v55 }
  0xad   :  { %v179_v58 = vsub.f32 1.0, %v172_v57 }
  0xae   :  { %v177_v54 = vadd.f32 %v176_v51, %v133_v48 }
  0xb0   :  { %283 = vtanh.f32 %v177_v54 }
  0xb6   :  { %v284_v59 = vpop.eup %283 }
  0xb7   :  { %v180_v60 = vmul.f32 %v284_v59, %v179_v58 }
  0xb9   :  { %215 = vmatmul.f32.vlgmr.msra.gmra.mxu3 %v180_v60 }
 0x13c   :  { %v216_v62 = vpop.f32.mrf.mxu3 }
 0x13d   :  { %v217_v63 = vadd.f32 %v274_v61, %v216_v62 }
 0x13f   :  { %v224_v0 = vand.u32 2147483647, %v217_v63  ;;  %vm220_vm10 = vcmp.lt.f32.partialorder %v219_v5, %v217_v63  ;;  %v223_v8 = vmin.f32 %v217_v63, 0.0  ;;  %v245_v20 = vsel %vm244_vm11, %v217_v63, 0.0 }
 0x140   :  { %v265_v11 = vsel %vm220_vm10, 1.0, %v347_v10 }
 0x141   :  { %v225_v1 = vsub.f32 0.0, %v224_v0  ;;  %v234_v15 = vsub.f32 1.0, %v265_v11 }
 0x143   :  { %v226_v2 = vmul.f32 1.442695, %v225_v1 }
 0x145   :  { %285 = vpow2.f32 %v226_v2 }
 0x14b   :  { %v286_v3 = vpop.eup %285 }
 0x14c   :  { %v228_v4 = vadd.f32 1.0, %v286_v3 }
 0x14e   :  { %287 = vlog2.f32 %v228_v4 }
 0x154   :  { %v288_v7 = vpop.eup %287 }
 0x155   :  { %v230_v9 = vmul.f32 0.6931472, %v288_v7 }
 0x157   :  { %v231_v13 = vsub.f32 %v223_v8, %v230_v9 }
 0x159   :  { %v232_v14 = vsub.f32 %v231_v13, %v217_v63  ;;  %v237_v16 = vsub.f32 0.0, %v231_v13  ;;  %v233_v17 = vmul.f32 %v265_v11, %v231_v13 }
 0x15b   :  { %v235_v18 = vmul.f32 %v234_v15, %v232_v14  ;;  %v246_v21 = vsel %vm243_vm12, %v237_v16, %v245_v20 }
 0x15d   :  { %v236_v19 = vadd.f32 %v235_v18, %v233_v17 }
 0x15f   :  { %v247_v22 = vsel %vm242_vm13, %v236_v19, %v246_v21 }
 0x160   :  { %v248_v23 = vsel %vm241_vm14, %v265_v11, %v247_v22 }
 0x161   :  { %v249_v24 = vsel %vm240_vm15, %v217_v63, %v248_v23 }
 0x162   :  { %250 = vst [vmem:[%s404_s5] sm:$0x3] %v249_v24 }
 0x163   :  { %255 = vsyncpa [#allocation3], 1 }
 0x164   :  { %256 = vsyncpa [#allocation5], 1 }

</bundles_post_ra>
